<compile_context>
chip_gen: v7x
topology: tpu7x:2x2x1
jax: 0.10.0
libtpu: 0.0.40
codegen_flags: <defaults>
</compile_context>

<pallas_src>
import functools

import jax
import jax.numpy as jnp
from jax import lax
from jax.experimental import pallas as pl
from jax.experimental.pallas import tpu as pltpu


# ---------------------------------------------------------------------------
# Fused Pallas kernel: pool (tiled elementwise accumulation) + FC + CE loss
# ---------------------------------------------------------------------------
def _aux_head_kernel(x_ref, w_ref, b_ref, tgt_ref, logits_ref, loss_ref,
                     acc_ref, *, inv_s, loss_weight):
    step = pl.program_id(0)

    @pl.when(step == 0)
    def _():
        acc_ref[...] = jnp.zeros_like(acc_ref)

    # Hot loop: pure VPU elementwise add, no cross-lane reduction per step.
    acc_ref[...] += x_ref[...].astype(jnp.float32)

    @pl.when(step == pl.num_programs(0) - 1)
    def _():
        # Single cross-lane (XLU) reduction + mean: (N, C, TILE_S) -> (N, C)
        pooled = jnp.sum(acc_ref[...], axis=-1) * inv_s
        # dropout: eval mode == identity (see TODO at top of file)

        logits = jnp.dot(pooled, w_ref[...],
                         preferred_element_type=jnp.float32) + b_ref[...]
        logits_ref[...] = logits.astype(logits_ref.dtype)

        # cross entropy, mean over batch, scaled by loss_weight
        n, p = logits.shape
        m = jnp.max(logits, axis=-1, keepdims=True)
        z = logits - m
        lse = jnp.log(jnp.sum(jnp.exp(z), axis=-1, keepdims=True))      # (N, 1)
        cls = lax.broadcasted_iota(jnp.int32, (n, p), 1)
        onehot = (cls == tgt_ref[...]).astype(jnp.float32)               # (N, P)
        tgt_z = jnp.sum(onehot * z, axis=-1, keepdims=True)              # (N, 1)
        nll = lse - tgt_z                                                # (N, 1)
        loss_ref[...] = jnp.sum(nll, axis=0, keepdims=True) * (loss_weight / n)


# ---------------------------------------------------------------------------
# Tile selection: largest multiple-of-128 divisor of S fitting a VMEM budget
# ---------------------------------------------------------------------------
def _pick_tile_s(s, n, c, itemsize, max_block_bytes=4 << 20):
    if s % 128 != 0:
        return s                      # full extent is the only legal block here
    row_bytes = n * c * itemsize
    best = 128
    t = 128
    while t <= s:
        if s % t == 0 and t * row_bytes <= max_block_bytes:
            best = t
        t += 128
    return best


# ---------------------------------------------------------------------------
# Wrapper
# ---------------------------------------------------------------------------
def aux_head_forward(x, target, w, b, *, loss_weight=0.25, tile_s=None):
    """x: (N, C, D, H, W); target: (N,) int; w: (C, P); b: (P,)."""
    if target is None:
        return None

    n, c, d, h, ww = x.shape
    s = d * h * ww
    p = w.shape[1]

    x3d = x.reshape(n, c, s)                      # free reshape, native layout
    tgt = target.reshape(n, 1).astype(jnp.int32)
    b2d = b.reshape(1, p).astype(jnp.float32)

    if tile_s is None:
        tile_s = _pick_tile_s(s, n, c, x.dtype.itemsize)
    # Last block dim must be a multiple of 128 dividing S, or the full axis.
    if tile_s != s and (s % tile_s != 0 or tile_s % 128 != 0):
        tile_s = s
    grid = (s // tile_s,)

    kernel = functools.partial(_aux_head_kernel,
                               inv_s=1.0 / float(s),
                               loss_weight=float(loss_weight))

    logits, loss = pl.pallas_call(
        kernel,
        out_shape=(jax.ShapeDtypeStruct((n, p), jnp.float32),
                   jax.ShapeDtypeStruct((1, 1), jnp.float32)),
        grid_spec=pltpu.PrefetchScalarGridSpec(
            num_scalar_prefetch=0,
            grid=grid,
            in_specs=[
                pl.BlockSpec((n, c, tile_s), lambda i: (0, 0, i)),  # x slab
                pl.BlockSpec((c, p), lambda i: (0, 0)),             # fc weight
                pl.BlockSpec((1, p), lambda i: (0, 0)),             # fc bias
                pl.BlockSpec((n, 1), lambda i: (0, 0)),             # targets
            ],
            out_specs=(pl.BlockSpec((n, p), lambda i: (0, 0)),      # logits
                       pl.BlockSpec((1, 1), lambda i: (0, 0))),     # loss
            scratch_shapes=[pltpu.VMEM((n, c, tile_s), jnp.float32)],  # pool acc
        ),
        compiler_params=pltpu.CompilerParams(
            dimension_semantics=("arbitrary",)),   # reduction over spatial tiles
    )(x3d, w, b2d, tgt)

    return logits, loss[0, 0]


# ---------------------------------------------------------------------------
# Pure-JAX reference (matches the PyTorch module in eval mode)
# ---------------------------------------------------------------------------
def aux_head_ref(x, target, w, b, loss_weight=0.25):
    pooled = jnp.mean(x, axis=(2, 3, 4))                 # (N, C)
    logits = pooled @ w + b                              # (N, P)
    logz = jax.nn.log_softmax(logits, axis=-1)
    nll = -jnp.take_along_axis(logz, target.reshape(-1, 1), axis=-1)[:, 0]
    return logits, loss_weight * jnp.mean(nll)


if __name__ == "__main__":
    N, C, P = 2, 32, 16          # batch, inplanes, planes (num classes)
    D, H, W = 4, 8, 8            # small 3D feature map -> S = 256

    key = jax.random.PRNGKey(0)
    kx, kt, kw = jax.random.split(key, 3)
    x = jax.random.normal(kx, (N, C, D, H, W), dtype=jnp.float32)
    target = jax.random.randint(kt, (N,), 0, P, dtype=jnp.int32)
    # fc init as in AuxHead.init_weights: weight ~ N(0, 0.01), bias = 0
    # stored as (inplanes, planes) == torch weight transposed
    w = (0.01 * jax.random.normal(kw, (C, P))).astype(jnp.float32)
    b = jnp.zeros((P,), jnp.float32)

    ref_logits, ref_loss = aux_head_ref(x, target, w, b)

    # 1) auto-picked tile (whole spatial extent fits -> single grid step)
    fwd = jax.jit(functools.partial(aux_head_forward, loss_weight=0.25))
    logits, loss = jax.block_until_ready(fwd(x, target, w, b))
    assert logits.shape == (N, P)
    assert jnp.allclose(logits, ref_logits, atol=1e-5, rtol=1e-5)
    assert jnp.allclose(loss, ref_loss, atol=1e-6, rtol=1e-5)

    # 2) forced 128-wide tile -> exercises multi-step pipelined accumulation
    fwd_tiled = jax.jit(functools.partial(aux_head_forward,
                                          loss_weight=0.25, tile_s=128))
    logits2, loss2 = jax.block_until_ready(fwd_tiled(x, target, w, b))
    assert jnp.allclose(logits2, ref_logits, atol=1e-5, rtol=1e-5)
    assert jnp.allclose(loss2, ref_loss, atol=1e-6, rtol=1e-5)

    print("KERNEL_OK")
</pallas_src>

<mosaic_0001>
module attributes {stable_mosaic.version = 11 : i64} {
  func.func @_aux_head_kernel(%arg0: i32, %arg1: memref<2x32x256xf32, #tpu.memory_space<vmem>>, %arg2: memref<32x16xf32, #tpu.memory_space<vmem>>, %arg3: memref<1x16xf32, #tpu.memory_space<vmem>>, %arg4: memref<2x1xi32, #tpu.memory_space<vmem>>, %arg5: memref<2x16xf32, #tpu.memory_space<vmem>>, %arg6: memref<1x1xf32, #tpu.memory_space<vmem>>, %arg7: memref<2x32x256xf32, #tpu.memory_space<vmem>>) attributes {dimension_semantics = [#tpu.dimension_semantics<arbitrary>], iteration_bounds = array<i64: 1>, scalar_prefetch = 0 : i64, scratch_operands = 1 : i64, tpu.core_type = #tpu.core_type<tc>, window_params = [{transform_indices = @transform_0, window_bounds = array<i64: 2, 32, 256>}, {pipeline_mode = #tpu.pipeline_mode<synchronous>, transform_indices = @transform_1, window_bounds = array<i64: 32, 16>}, {pipeline_mode = #tpu.pipeline_mode<synchronous>, transform_indices = @transform_2, window_bounds = array<i64: 1, 16>}, {pipeline_mode = #tpu.pipeline_mode<synchronous>, transform_indices = @transform_3, window_bounds = array<i64: 2, 1>}, {pipeline_mode = #tpu.pipeline_mode<synchronous>, transform_indices = @transform_4, window_bounds = array<i64: 2, 16>}, {pipeline_mode = #tpu.pipeline_mode<synchronous>, transform_indices = @transform_5, window_bounds = array<i64: 1, 1>}]} {
    %c0_i32 = arith.constant 0 : i32
    %0 = arith.cmpi eq, %arg0, %c0_i32 : i32
    %1 = arith.extui %0 : i1 to i32
    %c0_i32_0 = arith.constant 0 : i32
    %2 = arith.cmpi ne, %1, %c0_i32_0 : i32
    scf.if %2 {
      %cst = arith.constant 0.000000e+00 : f32
      %10 = vector.broadcast %cst : f32 to vector<2x32x256xf32>
      %c0_11 = arith.constant 0 : index
      %c0_12 = arith.constant 0 : index
      %c0_13 = arith.constant 0 : index
      %11 = vector.load %arg7[%c0_11, %c0_12, %c0_13] : memref<2x32x256xf32, #tpu.memory_space<vmem>>, vector<2x32x256xf32>
      tpu.vector_store %arg7[%c0_11, %c0_12, %c0_13], %10 {strides = array<i32>} : memref<2x32x256xf32, #tpu.memory_space<vmem>>, vector<2x32x256xf32>,
    } else {
    }
    %c0 = arith.constant 0 : index
    %c0_1 = arith.constant 0 : index
    %c0_2 = arith.constant 0 : index
    %3 = vector.load %arg7[%c0, %c0_1, %c0_2] : memref<2x32x256xf32, #tpu.memory_space<vmem>>, vector<2x32x256xf32>
    %c0_3 = arith.constant 0 : index
    %c0_4 = arith.constant 0 : index
    %c0_5 = arith.constant 0 : index
    %4 = vector.load %arg1[%c0_3, %c0_4, %c0_5] : memref<2x32x256xf32, #tpu.memory_space<vmem>>, vector<2x32x256xf32>
    %5 = arith.addf %3, %4 : vector<2x32x256xf32>
    %c0_6 = arith.constant 0 : index
    %c0_7 = arith.constant 0 : index
    %c0_8 = arith.constant 0 : index
    %6 = vector.load %arg7[%c0_6, %c0_7, %c0_8] : memref<2x32x256xf32, #tpu.memory_space<vmem>>, vector<2x32x256xf32>
    tpu.vector_store %arg7[%c0_6, %c0_7, %c0_8], %5 {strides = array<i32>} : memref<2x32x256xf32, #tpu.memory_space<vmem>>, vector<2x32x256xf32>,
    %c0_i32_9 = arith.constant 0 : i32
    %7 = arith.cmpi eq, %arg0, %c0_i32_9 : i32
    %8 = arith.extui %7 : i1 to i32
    %c0_i32_10 = arith.constant 0 : i32
    %9 = arith.cmpi ne, %8, %c0_i32_10 : i32
    scf.if %9 {
      %c0_11 = arith.constant 0 : index
      %c0_12 = arith.constant 0 : index
      %c0_13 = arith.constant 0 : index
      %10 = vector.load %arg7[%c0_11, %c0_12, %c0_13] : memref<2x32x256xf32, #tpu.memory_space<vmem>>, vector<2x32x256xf32>
      %cst = arith.constant dense<0.000000e+00> : vector<2x32xf32>
      %11 = vector.multi_reduction <add>, %10, %cst [2] : vector<2x32x256xf32> to vector<2x32xf32>
      %cst_14 = arith.constant 3.906250e-03 : f32
      %12 = vector.broadcast %cst_14 : f32 to vector<2x32xf32>
      %13 = arith.mulf %11, %12 : vector<2x32xf32>
      %c0_15 = arith.constant 0 : index
      %c0_16 = arith.constant 0 : index
      %14 = vector.load %arg2[%c0_15, %c0_16] : memref<32x16xf32, #tpu.memory_space<vmem>>, vector<32x16xf32>
      %cst_17 = arith.constant dense<0.000000e+00> : vector<2x16xf32>
      %15 = tpu.matmul %13, %14, %cst_17 {dimension_numbers = #tpu.dot_dimension_numbers<[1], [0], [0], [1], [0, 0, 1, 1], [], []>} : vector<2x32xf32>, vector<32x16xf32>, vector<2x16xf32> -> vector<2x16xf32>
      %c0_18 = arith.constant 0 : index
      %c0_19 = arith.constant 0 : index
      %16 = vector.load %arg3[%c0_18, %c0_19] : memref<1x16xf32, #tpu.memory_space<vmem>>, vector<1x16xf32>
      %17 = vector.broadcast %16 : vector<1x16xf32> to vector<2x16xf32>
      %18 = arith.addf %15, %17 : vector<2x16xf32>
      %c0_20 = arith.constant 0 : index
      %c0_21 = arith.constant 0 : index
      %19 = vector.load %arg5[%c0_20, %c0_21] : memref<2x16xf32, #tpu.memory_space<vmem>>, vector<2x16xf32>
      tpu.vector_store %arg5[%c0_20, %c0_21], %18 {strides = array<i32>} : memref<2x16xf32, #tpu.memory_space<vmem>>, vector<2x16xf32>,
      %cst_22 = arith.constant dense<0xFF800000> : vector<2xf32>
      %20 = vector.multi_reduction <maximumf>, %18, %cst_22 [1] : vector<2x16xf32> to vector<2xf32>
      %21 = vector.shape_cast %20 : vector<2xf32> to vector<2x1xf32>
      %22 = vector.broadcast %21 : vector<2x1xf32> to vector<2x16xf32>
      %23 = arith.subf %18, %22 : vector<2x16xf32>
      %24 = math.exp %23 : vector<2x16xf32>
      %cst_23 = arith.constant dense<0.000000e+00> : vector<2xf32>
      %25 = vector.multi_reduction <add>, %24, %cst_23 [1] : vector<2x16xf32> to vector<2xf32>
      %26 = vector.shape_cast %25 : vector<2xf32> to vector<2x1xf32>
      %27 = math.log %26 : vector<2x1xf32>
      %28 = tpu.iota {dimensions = array<i32: 1>} : vector<2x16xi32>
      %c0_24 = arith.constant 0 : index
      %c0_25 = arith.constant 0 : index
      %29 = vector.load %arg4[%c0_24, %c0_25] : memref<2x1xi32, #tpu.memory_space<vmem>>, vector<2x1xi32>
      %30 = vector.broadcast %29 : vector<2x1xi32> to vector<2x16xi32>
      %31 = arith.cmpi eq, %28, %30 : vector<2x16xi32>
      %32 = arith.extui %31 : vector<2x16xi1> to vector<2x16xi32>
      %33 = arith.sitofp %32 : vector<2x16xi32> to vector<2x16xf32>
      %34 = arith.mulf %33, %23 : vector<2x16xf32>
      %cst_26 = arith.constant dense<0.000000e+00> : vector<2xf32>
      %35 = vector.multi_reduction <add>, %34, %cst_26 [1] : vector<2x16xf32> to vector<2xf32>
      %36 = vector.shape_cast %35 : vector<2xf32> to vector<2x1xf32>
      %37 = arith.subf %27, %36 : vector<2x1xf32>
      %cst_27 = arith.constant dense<0.000000e+00> : vector<1xf32>
      %38 = vector.multi_reduction <add>, %37, %cst_27 [0] : vector<2x1xf32> to vector<1xf32>
      %39 = vector.shape_cast %38 : vector<1xf32> to vector<1x1xf32>
      %cst_28 = arith.constant 1.250000e-01 : f32
      %40 = vector.broadcast %cst_28 : f32 to vector<1x1xf32>
      %41 = arith.mulf %39, %40 : vector<1x1xf32>
      %c0_29 = arith.constant 0 : index
      %c0_30 = arith.constant 0 : index
      %42 = vector.load %arg6[%c0_29, %c0_30] : memref<1x1xf32, #tpu.memory_space<vmem>>, vector<1x1xf32>
      tpu.vector_store %arg6[%c0_29, %c0_30], %41 {strides = array<i32>} : memref<1x1xf32, #tpu.memory_space<vmem>>, vector<1x1xf32>,
    } else {
    }
    return
  }
  func.func @transform_0(%arg0: i32) -> (i32, i32, i32) {
    %c0_i32 = arith.constant 0 : i32
    %c0_i32_0 = arith.constant 0 : i32
    %c0_i32_1 = arith.constant 0 : i32
    return %c0_i32, %c0_i32_0, %arg0 : i32, i32, i32
  }
  func.func @transform_1(%arg0: i32) -> (i32, i32) {
    %c0_i32 = arith.constant 0 : i32
    %c0_i32_0 = arith.constant 0 : i32
    %c0_i32_1 = arith.constant 0 : i32
    return %c0_i32, %c0_i32_0 : i32, i32
  }
  func.func @transform_2(%arg0: i32) -> (i32, i32) {
    %c0_i32 = arith.constant 0 : i32
    %c0_i32_0 = arith.constant 0 : i32
    %c0_i32_1 = arith.constant 0 : i32
    return %c0_i32, %c0_i32_0 : i32, i32
  }
  func.func @transform_3(%arg0: i32) -> (i32, i32) {
    %c0_i32 = arith.constant 0 : i32
    %c0_i32_0 = arith.constant 0 : i32
    %c0_i32_1 = arith.constant 0 : i32
    return %c0_i32, %c0_i32_0 : i32, i32
  }
  func.func @transform_4(%arg0: i32) -> (i32, i32) {
    %c0_i32 = arith.constant 0 : i32
    %c0_i32_0 = arith.constant 0 : i32
    %c0_i32_1 = arith.constant 0 : i32
    return %c0_i32, %c0_i32_0 : i32, i32
  }
  func.func @transform_5(%arg0: i32) -> (i32, i32) {
    %c0_i32 = arith.constant 0 : i32
    %c0_i32_0 = arith.constant 0 : i32
    %c0_i32_1 = arith.constant 0 : i32
    return %c0_i32, %c0_i32_0 : i32, i32
  }
}

</mosaic_0001>

<bundles_post_ra>
// kernel: aux_head_forward.1
= control target key start
LH: loop header
LB: loop body
LE: loop exit
PB: predicated region body
PF: predicated region fallthrough
CT: control target
= control target key end

     0   :  { %11 = vsyncpa [#allocation4], 0  ;;  %s584_s0 = inlined_call_operand.vmem [shape: f32[2,32,256], index: 0, kind: input, shape index: {}]   ;;  %s585_s1 = inlined_call_operand.vmem [shape: f32[32,16], index: 1, kind: input, shape index: {}]   ;;  %s586_s2 = inlined_call_operand.vmem [shape: f32[1,16], index: 2, kind: input, shape index: {}]   ;;  %s587_s3 = inlined_call_operand.vmem [shape: s32[2,1], index: 3, kind: input, shape index: {}]   ;;  %s588_s4 = inlined_call_operand.hbm [shape: f32[2,16], index: 4, kind: output, shape index: {0}]   ;;  %s589_s5 = inlined_call_operand.hbm [shape: f32[1,1], index: 5, kind: output, shape index: {1}]  }
   0x1   :  { %v65_v0 = vld [vmem:[%s584_s0 + $0x40] sm:$0xff]  ;;  %v66_v1 = vld [vmem:[%s584_s0 + $0x48] sm:$0xff]  ;;  %v67_v5 = vld [vmem:[%s584_s0 + $0x50] sm:$0xff] }
   0x2   :  { %v57_v2 = vld [vmem:[%s584_s0] sm:$0xff]  ;;  %v136_v3 = vadd.f32 %v66_v1, %v65_v0  ;;  %v58_v4 = vld [vmem:[%s584_s0 + $0x8] sm:$0xff]  ;;  %v68_v6 = vld [vmem:[%s584_s0 + $0x58] sm:$0xff] }
   0x3   :  { %v124_v7 = vadd.f32 %v58_v4, %v57_v2  ;;  %v59_v8 = vld [vmem:[%s584_s0 + $0x10] sm:$0xff]  ;;  %v60_v9 = vld [vmem:[%s584_s0 + $0x18] sm:$0xff]  ;;  %v139_v10 = vadd.f32 %v68_v6, %v67_v5  ;;  %v69_v12 = vld [vmem:[%s584_s0 + $0x60] sm:$0xff] }
   0x4   :  { %137 = vadd.xlane.f32.xlu1 %v136_v3  ;;  %v127_v11 = vadd.f32 %v60_v9, %v59_v8  ;;  %v70_v13 = vld [vmem:[%s584_s0 + $0x68] sm:$0xff]  ;;  %v61_v14 = vld [vmem:[%s584_s0 + $0x20] sm:$0xff] }
   0x5   :  { %125 = vadd.xlane.f32.xlu0 %v124_v7  ;;  %v62_v15 = vld [vmem:[%s584_s0 + $0x28] sm:$0xff] }
   0x6   :  { %12 = vsyncpa [#allocation6], 0  ;;  %v142_v16 = vadd.f32 %v70_v13, %v69_v12  ;;  %v130_v17 = vadd.f32 %v62_v15, %v61_v14  ;;  %v71_v18 = vld [vmem:[%s584_s0 + $0x70] sm:$0xff]  ;;  %v72_v19 = vld [vmem:[%s584_s0 + $0x78] sm:$0xff]  ;;  %v445_v27 = vmov 0.0|0.0   ;;  %vm446_vm0 = vmmov 0  }
   0x7   :  { %v63_v20 = vld [vmem:[%s584_s0 + $0x30] sm:$0xff]  ;;  %v64_v21 = vld [vmem:[%s584_s0 + $0x38] sm:$0xff]  ;;  %v145_v22 = vadd.f32 %v72_v19, %v71_v18  ;;  %v156_v24 = vld [vmem:[%s585_s1] sm:$0xff]  ;;  %379 = vmatprep.subr.bf16.mxu0 %v445_v27  ;;  %v447_v31 = vmov 0.0   ;;  %v175_v32 = vlaneseq  ;;  %vm186_vm1 = vcmask 130112  }
   0x8   :  { %140 = vadd.xlane.f32.xlu1 %v139_v10  ;;  %v133_v23 = vadd.f32 %v64_v21, %v63_v20  ;;  %v157_v25 = vld [vmem:[%s585_s1 + $0x8] sm:$0xff]  ;;  %v158_v28 = vld [vmem:[%s585_s1 + $0x10] sm:$0xff]  ;;  %v159_v29 = vld [vmem:[%s585_s1 + $0x18] sm:$0xff]  ;;  %376 = vmatprep.mubr.msk.f32.mxu0 %vm446_vm0, %v447_v31  ;;  %vm193_vm2 = vcmask 195712   ;;  %vm200_vm3 = vcmask 261312   ;;  %vm221_vm4 = vcmask 1041409  }
   0x9   :  { %128 = vadd.xlane.f32.xlu0 %v127_v11  ;;  %v380_v26 = vpack.c.bf16 %v157_v25, %v156_v24  ;;  %v383_v30 = vpack.c.bf16 %v159_v29, %v158_v28  ;;  %v542_v34 = vand.u32 127, %v175_v32  ;;  %v178_v39 = vshrl.u32 %v175_v32, 7  ;;  %v309_v9 = vld [vmem:[%s587_s3] sm:$0x3] }
   0xa   :  { %vm223_vm5 = vcmask 261120   ;;  %v448_v10 = vmov 0   ;;  %v360_v11 = vld [vmem:[%s586_s2] ss:$0 sm:$0xff]  ;;  %vm296_vm6 = vcmask 123904   ;;  %s449_s2 = smov [#allocation3]  }
   0xb   :  { %381 = vmatpush3.bf16.msra.mxu0 %v380_v26  ;;  %v181_v36 = vadd.s32 4294967288, %v542_v34  ;;  %v188_v38 = vadd.s32 4294967280, %v542_v34  ;;  %v195_v43 = vadd.s32 4294967272, %v542_v34  ;;  %v179_v47 = vsub.s32 %v542_v34, %v178_v39  ;;  %391 = vset.pattern.permute.xlu1 %v448_v10  ;;  %s338_s3 = sshll.u32 %s449_s2, 4  ;;  %s339_s3 = int_to_ptr.vmem [resolvable:$true] %s338_s3 }
   0xc   :  { %143 = vadd.xlane.f32.xlu1 %v142_v16  ;;  %382 = vmatprep.subr.bf16.mxu0 %v445_v27  ;;  %s397_s10 = scalar_lea.vmem %s339_s3, 32  ;;  %p402_p1 = scmp.lt.s32.totalorder %s339_s3, %s339_s3 }
   0xd   :  { %131 = vadd.xlane.f32.xlu0 %v130_v17  ;;  %v184_v41 = vsub.s32 %v181_v36, %v178_v39  ;;  %v191_v45 = vsub.s32 %v188_v38, %v178_v39  ;;  %v198_v54 = vsub.s32 %v195_v43, %v178_v39  ;;  %p398_p0 = scmp.ne.s32.totalorder %s339_s3, %s397_s10  ;;  %p403_p2 = scmp.lt.s32.totalorder %s397_s10, %s397_s10 }
   0xe   :  { %392 = vset.pattern.permute.xlu0 %v448_v10 }
   0xf   :  { %384 = vmatpush3.bf16.msra.mxu0 %v383_v30  ;;  %p404_p3 = por %p403_p2, %p402_p1 }
  0x10   :  { %146 = vadd.xlane.f32.xlu1 %v145_v22 }
  0x11   :  { %134 = vadd.xlane.f32.xlu0 %v133_v23  ;;  %p405_p4 = pnand %p404_p3, %p398_p0 }
  0x21   :  { %311 = vperm.xlu1 %391, %v309_v9  }
  0x91   :  { %v138_v33 = vpop.xlane.xlu1 %137 }
  0x92   :  { %v126_v35 = vpop.xlane.xlu0 %125  ;;  %v152_v48 = vmul.f32 0.00390625, %v138_v33 }
  0x93   :  { %v148_v51 = vmul.f32 0.00390625, %v126_v35 }
  0x94   :  { %v205_v58 = vrot.slane %v152_v48, %v179_v47 }
  0x95   :  { %v141_v37 = vpop.xlane.xlu1 %140  ;;  %v180_v62 = vrot.slane %v148_v51, %v179_v47 }
  0x96   :  { %v129_v40 = vpop.xlane.xlu0 %128  ;;  %v153_v42 = vmul.f32 0.00390625, %v141_v37 }
  0x97   :  { %v149_v44 = vmul.f32 0.00390625, %v129_v40 }
  0x98   :  { %v209_v53 = vrot.slane %v153_v42, %v184_v41 }
  0x99   :  { %v144_v46 = vpop.xlane.xlu1 %143  ;;  %v185_v55 = vrot.slane %v149_v44, %v184_v41 }
  0x9a   :  { %v154_v49 = vmul.f32 0.00390625, %v144_v46  ;;  %v132_v50 = vpop.xlane.xlu0 %131  ;;  %v210_v0 = vsel %vm186_vm1, %v209_v53, %v205_v58 }
  0x9b   :  { %v150_v52 = vmul.f32 0.00390625, %v132_v50  ;;  %v187_v2 = vsel %vm186_vm1, %v185_v55, %v180_v62 }
  0x9c   :  { %v214_v56 = vrot.slane %v154_v49, %v191_v45 }
  0x9d   :  { %v147_v57 = vpop.xlane.xlu1 %146  ;;  %v192_v59 = vrot.slane %v150_v52, %v191_v45 }
  0x9e   :  { %v155_v60 = vmul.f32 0.00390625, %v147_v57  ;;  %v135_v61 = vpop.xlane.xlu0 %134  ;;  %v215_v3 = vsel %vm193_vm2, %v214_v56, %v210_v0 }
  0x9f   :  { %v151_v63 = vmul.f32 0.00390625, %v135_v61  ;;  %v194_v5 = vsel %vm193_vm2, %v192_v59, %v187_v2 }
  0xa0   :  { %v219_v1 = vrot.slane %v155_v60, %v198_v54 }
  0xa1   :  { %v199_v4 = vrot.slane %v151_v63, %v198_v54  ;;  %v312_v19 = vpop.permute.xlu1 %311 }
  0xa2   :  { %v220_v6 = vsel %vm200_vm3, %v219_v1, %v215_v3  ;;  %vm313_vm7 = vcmp.eq.s32.totalorder %v542_v34, %v312_v19 }
  0xa3   :  { %v201_v7 = vsel %vm200_vm3, %v199_v4, %v194_v5  ;;  %v362_v20 = vsel %vm313_vm7, 1.0, %v447_v31 }
  0xa4   :  { %v222_v8 = vsel %vm221_vm4, %v220_v6, %v201_v7 }
  0xa5   :  { %377 = vmatmul.mubr.msk.f32.vlgmr.msra.gmra.mrb[0].mxu0 %vm223_vm5, %v222_v8 }
 0x178   :  { %v292_v12 = vpop.f32.mrb[0].mxu0 }
 0x179   :  { %v293_v13 = vadd.f32 %v360_v11, %v292_v12  ;;  %v378_v14 = vpop.f32.mrb[1].mxu0 }
 0x17b   :  { %v298_v15 = vsel %vm296_vm6, %v293_v13, -inf  ;;  %297 = vst.msk [vmem:[#allocation3] sm:$0x3] %vm296_vm6, %v293_v13 }
 0x17c   :  { %299 = vmax.xlane.f32.xlu0 %v298_v15 }
 0x209   :  { %v300_v16 = vpop.xlane.xlu0 %299 }
 0x20a   :  { %v301_v17 = vsub.f32 %v293_v13, %v300_v16 }
 0x20c   :  { %v302_v18 = vmul.f32 1.442695, %v301_v17  ;;  %v316_v23 = vmul.f32 %v362_v20, %v301_v17 }
 0x20e   :  { %393 = vpow2.f32 %v302_v18  ;;  %v317_v24 = vsel %vm296_vm6, %v316_v23, 0.0 }
 0x218   :  { %v394_v21 = vpop.eup %393 }
 0x219   :  { %v304_v22 = vsel %vm296_vm6, %v394_v21, 0.0 }
 0x21a   :  { %305 = vadd.xlane.f32.xlu0 %v304_v22 }
 0x21e   :  { %318 = vadd.xlane.f32.xlu0 %v317_v24 }
 0x21f   :  { %408 = shalt.err (!%p405_p4)
}
 0x220   :  { %s409_s13 = scalar_lea.hbm %s588_s4, 32 }
 0x221   :  { %p410_p5 = scmp.ne.s32.totalorder %s588_s4, %s409_s13  ;;  %p413_p6 = scmp.lt.u32.totalorder %s409_s13, %s588_s4 }
 0x223   :  { %p415_p7 = pnand %p413_p6, %p410_p5 }
 0x225   :  { %418 = shalt.err (!%p415_p7)
}
 0x226   :  { %341 = dma.vmem_to_hbm [thread:$0]  %s339_s3, 32, %s588_s4, [#allocation4]   ;;  %vm321_vm8 = vcmask 1041408   ;;  %vm330_vm9 = vcmask 0  }
 0x227   :  { %s450_s20 = smov [#allocation5]  }
 0x228   :  { %s348_s21 = sshll.u32 %s450_s20, 4  ;;  %s349_s21 = int_to_ptr.vmem [resolvable:$true] %s348_s21 }
 0x229   :  { %s419_s4 = scalar_lea.vmem %s349_s21, 16  ;;  %s423_s22 = scalar_lea.vmem %s349_s21, 32 }
 0x22a   :  { %p420_p8 = scmp.ne.s32.totalorder %s349_s21, %s419_s4  ;;  %p424_p9 = scmp.lt.s32.totalorder %s349_s21, %s349_s21 }
 0x22b   :  { %p425_p10 = scmp.lt.s32.totalorder %s423_s22, %s419_s4 }
 0x22d   :  { %p426_p11 = por %p425_p10, %p424_p9 }
 0x22f   :  { %p427_p12 = pnand %p426_p11, %p420_p8 }
 0x2a7   :  { %v306_v25 = vpop.xlane.xlu0 %305 }
 0x2a8   :  { %395 = vlog2.f32 %v306_v25 }
 0x2ab   :  { %v319_v28 = vpop.xlane.xlu0 %318 }
 0x2b2   :  { %v396_v26 = vpop.eup %395 }
 0x2b3   :  { %v308_v27 = vmul.f32 0.6931472, %v396_v26 }
 0x2b5   :  { %v320_v29 = vsub.f32 %v308_v27, %v319_v28 }
 0x2b7   :  { %v322_v30 = vsel %vm321_vm8, %v320_v29, 0.0 }
 0x2b8   :  { %v323_v31 = vrot.slane %v322_v30, 4 }
 0x2ba   :  { %v324_v32 = vadd.f32 %v323_v31, %v322_v30 }
 0x2bc   :  { %v325_v33 = vrot.slane %v324_v32, 2 }
 0x2be   :  { %v326_v34 = vadd.f32 %v325_v33, %v324_v32 }
 0x2c0   :  { %v327_v35 = vrot.slane %v326_v34, 1 }
 0x2c2   :  { %v328_v36 = vadd.f32 %v327_v35, %v326_v34 }
 0x2c4   :  { %v329_v37 = vmul.f32 0.125, %v328_v36 }
 0x2c6   :  { %331 = vst.msk [vmem:[#allocation5] sm:$0x1] %vm330_vm9, %v329_v37 }
 0x2c7   :  { %430 = shalt.err (!%p427_p12)
}
 0x2c8   :  { %s431_s25 = scalar_lea.hbm %s589_s5, 16 }
 0x2c9   :  { %p432_p13 = scmp.ne.s32.totalorder %s589_s5, %s431_s25  ;;  %p435_p0 = scmp.lt.u32.totalorder %s431_s25, %s589_s5 }
 0x2cb   :  { %p437_p1 = pnand %p435_p0, %p432_p13 }
 0x2cd   :  { %440 = shalt.err (!%p437_p1)
}
 0x2ce   :  { %351 = dma.vmem_to_hbm [thread:$0]  %s349_s21, 16, %s589_s5, [#allocation6]  }
 0x2cf   :  { %441 = dma.done.wait [#allocation4], 32  }
 0x2d0   :  { %442 = vsyncadd [#allocation4], 4294967264 }
 0x2d1   :  { %443 = dma.done.wait [#allocation6], 16  }
 0x2d2   :  { %444 = vsyncadd [#allocation6], 4294967280 }
 0x2d3   :  { %358 = vsyncpa [#allocation4], 1 }
 0x2d4   :  { %359 = vsyncpa [#allocation6], 1 }

</bundles_post_ra>
